<compile_context>
chip_gen: v7x
topology: tpu7x:2x2x1
jax: 0.10.0
libtpu: 0.0.40
codegen_flags: <defaults>
</compile_context>

<pallas_src>
import jax
import jax.numpy as jnp
from jax.experimental import pallas as pl
from jax.experimental.pallas import tpu as pltpu

OBJECTS = ("agent", "key", "door", "goal", "box", "ball")
_NUM_OBJ = len(OBJECTS)
_FEAT = 3
_ROWS = _NUM_OBJ * _FEAT          # 18

_MAX_BLOCK_B = 32768              # lanes; ~12.6 MiB double-buffered VMEM
_SINGLE_BLOCK_B = 1024            # below this, one full-extent block is fine


def _round_up(n, m):
    return ((n + m - 1) // m) * m


def _cast_kernel(x_ref, o_ref):
    # x_ref: (18, TB) int32 (or float32) tile in VMEM, lane axis = batch.
    # o_ref: (18, TB) float32 tile in VMEM.
    # Pure cast: single wide read, single unmasked lane-dense store.
    o_ref[...] = x_ref[...].astype(jnp.float32)


def factored_minigrid_position_feature_extractor(x, *, block_b=None,
                                                 lane_dense_output=False):
    """x: {obj: (B, 3) array}.  Returns (B, 6, 3) float32 with object order
    ('agent','key','door','goal','box','ball'), matching the PyTorch module.
    With lane_dense_output=True, returns the raw (18, B) float32 slab
    (row = 3*obj_idx + feature) so a downstream op can absorb the layout."""
    # ---- JAX-side fusion (layout plumbing, one fused XLA op chain) --------
    arrs = [jnp.asarray(x[name]) for name in OBJECTS]
    fused = jnp.stack(arrs, axis=1)                       # (B, 6, 3)
    B = fused.shape[0]
    # Normalize dtype for Mosaic (int64 from x64 mode would fail lowering);
    # float inputs are kept as f32 so values match the reference exactly.
    if jnp.issubdtype(fused.dtype, jnp.integer):
        fused = fused.astype(jnp.int32)
    else:
        fused = fused.astype(jnp.float32)
    fused = fused.reshape(B, _ROWS).T                     # (18, B), batch on lanes

    # ---- Tile selection (VMEM-budgeted; >=2 steps for dual-TC at big B) ---
    if block_b is None:
        block_b = _MAX_BLOCK_B
    block_b = max(128, min(int(block_b), _MAX_BLOCK_B))   # generation-safe cap

    if B <= _SINGLE_BLOCK_B:
        tb = B                                            # full-extent single block
    else:
        # At least 2 grid steps so "parallel" shards across v7x's two TCs;
        # tile is a multiple of 128 lanes (unmasked stores), capped by VMEM.
        tb = min(block_b, _round_up(pl.cdiv(B, 2), 128))
    grid = (pl.cdiv(B, tb),)

    bytes_accessed = _ROWS * B * 4 * 2                    # int32 in + f32 out

    out = pl.pallas_call(
        _cast_kernel,
        out_shape=jax.ShapeDtypeStruct((_ROWS, B), jnp.float32),
        grid_spec=pltpu.PrefetchScalarGridSpec(
            num_scalar_prefetch=0,
            grid=grid,
            in_specs=[pl.BlockSpec((_ROWS, tb), lambda i: (0, i))],
            out_specs=pl.BlockSpec((_ROWS, tb), lambda i: (0, i)),
        ),
        compiler_params=pltpu.CompilerParams(
            dimension_semantics=("parallel",),            # batch tiles across cores
            vmem_limit_bytes=32 * 1024 * 1024,            # headroom over v5e's 16 MiB default
        ),
        cost_estimate=pl.CostEstimate(
            flops=0, transcendentals=0, bytes_accessed=bytes_accessed),
    )(fused)                                              # (18, B) float32

    if lane_dense_output:
        return out
    # Layout plumbing back to the module's (B, 6, 3) contract.
    return out.T.reshape(B, _NUM_OBJ, _FEAT)


if __name__ == "__main__":
    def make_inputs(batch, key):
        keys = jax.random.split(key, _NUM_OBJ)
        # Deterministic synthetic "factored minigrid" input: int positions in [0, 16).
        return {
            name: jax.random.randint(k, (batch, _FEAT), 0, 16, dtype=jnp.int32)
            for name, k in zip(OBJECTS, keys)
        }

    def reference(x):
        # Pure-JAX reference of the PyTorch forward semantics.
        return jnp.stack([x[name] for name in OBJECTS], axis=1).astype(jnp.float32)

    # Small batch (single full-extent block), as in the module's typical use.
    x_small = make_inputs(2, jax.random.PRNGKey(0))
    out_small = jax.block_until_ready(
        factored_minigrid_position_feature_extractor(x_small))
    assert out_small.shape == (2, _NUM_OBJ, _FEAT), out_small.shape
    assert out_small.dtype == jnp.float32, out_small.dtype
    assert jnp.array_equal(out_small, reference(x_small)), "small-batch mismatch"

    # Larger batch NOT divisible by the tile: exercises the tiled (>=2 step,
    # ragged-last-block, parallel) path with no explicit padding.
    x_big = make_inputs(2305, jax.random.PRNGKey(1))
    out_big = jax.block_until_ready(
        factored_minigrid_position_feature_extractor(x_big))
    assert out_big.shape == (2305, _NUM_OBJ, _FEAT), out_big.shape
    assert jnp.array_equal(out_big, reference(x_big)), "large-batch mismatch"

    # Lane-dense output path (downstream absorbs the layout; no transpose op).
    out_ld = jax.block_until_ready(
        factored_minigrid_position_feature_extractor(x_small, lane_dense_output=True))
    assert out_ld.shape == (_ROWS, 2), out_ld.shape
    assert jnp.array_equal(out_ld.T.reshape(2, _NUM_OBJ, _FEAT),
                           reference(x_small)), "lane-dense mismatch"

    print("KERNEL_OK")
</pallas_src>

<mosaic_0001>
module attributes {stable_mosaic.version = 11 : i64} {
  func.func @_cast_kernel(%arg0: i32, %arg1: memref<18x2xi32, #tpu.memory_space<vmem>>, %arg2: memref<18x2xf32, #tpu.memory_space<vmem>>) attributes {dimension_semantics = [#tpu.dimension_semantics<parallel>], iteration_bounds = array<i64: 1>, scalar_prefetch = 0 : i64, scratch_operands = 0 : i64, tpu.core_type = #tpu.core_type<tc>, window_params = [{transform_indices = @transform_0, window_bounds = array<i64: 18, 2>}, {transform_indices = @transform_1, window_bounds = array<i64: 18, 2>}]} {
    %c0 = arith.constant 0 : index
    %c0_0 = arith.constant 0 : index
    %0 = vector.load %arg1[%c0, %c0_0] : memref<18x2xi32, #tpu.memory_space<vmem>>, vector<18x2xi32>
    %1 = arith.sitofp %0 : vector<18x2xi32> to vector<18x2xf32>
    %c0_1 = arith.constant 0 : index
    %c0_2 = arith.constant 0 : index
    %2 = vector.load %arg2[%c0_1, %c0_2] : memref<18x2xf32, #tpu.memory_space<vmem>>, vector<18x2xf32>
    tpu.vector_store %arg2[%c0_1, %c0_2], %1 {strides = array<i32>} : memref<18x2xf32, #tpu.memory_space<vmem>>, vector<18x2xf32>,
    return
  }
  func.func @transform_0(%arg0: i32) -> (i32, i32) {
    %c0_i32 = arith.constant 0 : i32
    %c0_i32_0 = arith.constant 0 : i32
    return %c0_i32, %arg0 : i32, i32
  }
  func.func @transform_1(%arg0: i32) -> (i32, i32) {
    %c0_i32 = arith.constant 0 : i32
    %c0_i32_0 = arith.constant 0 : i32
    return %c0_i32, %arg0 : i32, i32
  }
}

</mosaic_0001>

<bundles_post_ra>
// kernel: tpu_custom_call.1
= control target key start
LH: loop header
LB: loop body
LE: loop exit
PB: predicated region body
PF: predicated region fallthrough
CT: control target
= control target key end

     0   :  { %vm14_vm0 = vcmask 15360   ;;  %vm17_vm1 = vcmask 9216   ;;  %s51_s0 = inlined_call_operand.vmem [shape: s32[18,2], index: 0, kind: input, shape index: {}]   ;;  %s52_s1 = inlined_call_operand.vmem [shape: f32[18,2], index: 1, kind: output, shape index: {}]  }
   0x1   :  { %v8_v0 = vld [vmem:[%s51_s0] sm:$0xff]  ;;  %v9_v1 = vld [vmem:[%s51_s0 + $0x8] sm:$0xff]  ;;  %v10_v2 = vld [vmem:[%s51_s0 + $0x10] sm:$0x3] }
   0x2   :  { %v11_v3 = vcvt.s32.f32 %v8_v0  ;;  %v12_v4 = vcvt.s32.f32 %v9_v1  ;;  %v13_v5 = vcvt.s32.f32 %v10_v2 }
   0x4   :  { %15 = vst.msk [vmem:[%s52_s1] sm:$0xff] %vm14_vm0, %v11_v3  ;;  %16 = vst.msk [vmem:[%s52_s1 + $0x8] sm:$0xff] %vm14_vm0, %v12_v4 }
   0x5   :  { %18 = vst.msk [vmem:[%s52_s1 + $0x10] sm:$0x3] %vm17_vm1, %v13_v5 }

</bundles_post_ra>
